<compile_context>
chip_gen: v6e
topology: v6e:2x2x1
jax: 0.10.0
libtpu: 0.0.40
codegen_flags: <defaults>
</compile_context>

<pallas_src>
import functools

import jax
import jax.numpy as jnp
from jax.experimental import pallas as pl
from jax.experimental.pallas import tpu as pltpu

LANES = 128
SUBLANES = 8
MAX_BLOCK_ROWS_1IN = 8192   # 4 MiB per block, 1 input  -> ~8 MiB double-buffered
MAX_BLOCK_ROWS_2IN = 4096   # 2 MiB per block, 2 inputs -> ~8 MiB double-buffered


def _num_splits():
    # Two TensorCores stream HBM concurrently only on v7x; on single-TC parts a
    # second split buys nothing and can cost one duplicate clamped-block DMA.
    try:
        kind = jax.devices()[0].device_kind.lower()
    except Exception:
        return 1
    return 2 if "v7" in kind else 1


def _iou_loss_kernel(*refs, loc_loss_type, weighted, n_valid, blocks_per_split):
    if weighted:
        vals_ref, weight_ref, out_ref, acc_ref = refs
    else:
        vals_ref, out_ref, acc_ref = refs
        weight_ref = None

    c = pl.program_id(0)        # split (parallel) index
    i = pl.program_id(1)        # block index within the split (reduction axis)

    block_rows, lanes = vals_ref.shape
    acc_rows, _ = acc_ref.shape
    block_elems = block_rows * lanes

    @pl.when(i == 0)
    def _init():
        acc_ref[...] = jnp.zeros_like(acc_ref)

    v = vals_ref[...]
    if loc_loss_type == "iou":
        # -log stays in-kernel: EUP slot, free under the memory bound.
        losses = -jnp.log(v)
    elif loc_loss_type in ("linear_iou", "giou"):
        # for 'giou', `vals` already holds the gIoU values (selected in wrapper)
        losses = 1.0 - v
    else:
        raise NotImplementedError(loc_loss_type)

    if weighted:
        losses = losses * weight_ref[...]

    logical_block = c * blocks_per_split + i
    rem = n_valid - logical_block * block_elems

    def _accumulate(x):
        if block_rows == acc_rows:
            acc_ref[...] += x
        else:
            # (R,128)->(R/8,8,128) preserves the vreg layout; summing axis 0 is
            # pure vreg-to-vreg VALU adds into the small (8,128) accumulator.
            acc_ref[...] += x.reshape(block_rows // acc_rows, acc_rows, lanes).sum(axis=0)

    # Fast path: fully valid block -> no per-element mask work at all.
    @pl.when(rem >= block_elems)
    def _full():
        _accumulate(losses)

    # Slow path: ragged final block, or a clamped duplicate block (rem <= 0).
    # jnp.where is a select, so NaN/Inf from -log / mul of garbage OOB data is
    # dropped before it can reach the accumulator.
    @pl.when(rem < block_elems)
    def _ragged():
        row_id = jax.lax.broadcasted_iota(jnp.int32, (block_rows, lanes), 0)
        lane_id = jax.lax.broadcasted_iota(jnp.int32, (block_rows, lanes), 1)
        local_idx = row_id * lanes + lane_id
        _accumulate(jnp.where(local_idx < rem, losses, 0.0))

    @pl.when(i == pl.num_programs(1) - 1)
    def _finalize():
        # Single deferred cross-sublane reduce -> (1, 128) lane-dense partial.
        out_ref[0] = jnp.sum(acc_ref[...], axis=0, keepdims=True)


def iou_loss(ious, gious=None, weight=None, *, loc_loss_type="iou"):
    """Pallas equivalent of IOULoss(loc_loss_type)(ious, gious, weight)."""
    if loc_loss_type == "giou":
        assert gious is not None
        vals = gious
    elif loc_loss_type in ("iou", "linear_iou"):
        vals = ious
    else:
        raise NotImplementedError(loc_loss_type)

    vals = jnp.asarray(vals, jnp.float32)

    weighted = weight is not None
    scalar_weight = None
    w = None
    if weighted:
        w = jnp.asarray(weight, jnp.float32)
        if w.size == 1:
            # sum(losses * c) == c * sum(losses): keep the kernel single-stream.
            scalar_weight = w.reshape(())
            weighted = False
            w = None
        elif w.shape != vals.shape:
            w = jnp.broadcast_to(w, vals.shape)

    flat = vals.reshape(-1)
    n = flat.shape[0]
    if n == 0:                                   # sum over nothing -> 0.0
        return jnp.zeros((), jnp.float32)

    wflat = w.reshape(-1) if weighted else None

    # Handle the <128-element lane tail in plain JAX instead of padding (which
    # would copy the whole HBM stream before a purely bandwidth-bound kernel).
    tail_n = n % LANES
    aligned_n = n - tail_n
    tail_sum = jnp.zeros((), jnp.float32)
    if tail_n:
        tail = flat[aligned_n:]
        if loc_loss_type == "iou":
            tail_losses = -jnp.log(tail)
        else:
            tail_losses = 1.0 - tail
        if weighted:
            tail_losses = tail_losses * wflat[aligned_n:]
        tail_sum = jnp.sum(tail_losses)

    if aligned_n == 0:
        total = tail_sum
        if scalar_weight is not None:
            total = total * scalar_weight
        return total

    rows = aligned_n // LANES
    prefix = flat[:aligned_n] if tail_n else flat
    inputs = [prefix.reshape(rows, LANES)]
    if weighted:
        wprefix = wflat[:aligned_n] if tail_n else wflat
        inputs.append(wprefix.reshape(rows, LANES))

    # Largest row block that fits the data: multiple of 8 sublanes, or the
    # whole array when it has fewer than 8 rows.  Weighted path uses half the
    # rows so the double-buffered streams stay within v5e's 16 MiB scoped VMEM
    # (and well under v7x's 64 MiB physical).
    max_rows = MAX_BLOCK_ROWS_2IN if weighted else MAX_BLOCK_ROWS_1IN
    if rows >= SUBLANES:
        block_rows = min(max_rows, (rows // SUBLANES) * SUBLANES)
    else:
        block_rows = rows
    nblocks = pl.cdiv(rows, block_rows)
    nsplits = min(_num_splits(), nblocks)
    bps = pl.cdiv(nblocks, nsplits)              # blocks per split

    def in_map(c, i):
        # With an odd block count the last logical block of the last split is
        # out of range; clamp it onto the final block and let the in-kernel
        # mask zero its contribution.
        return (jnp.minimum(c * bps + i, nblocks - 1), 0)

    in_specs = [pl.BlockSpec((block_rows, LANES), in_map) for _ in inputs]

    acc_rows = SUBLANES if block_rows % SUBLANES == 0 else block_rows

    kernel = functools.partial(
        _iou_loss_kernel,
        loc_loss_type=loc_loss_type,
        weighted=weighted,
        n_valid=aligned_n,
        blocks_per_split=bps,
    )

    partials = pl.pallas_call(
        kernel,
        out_shape=jax.ShapeDtypeStruct((nsplits, 1, LANES), jnp.float32),
        grid_spec=pltpu.PrefetchScalarGridSpec(
            num_scalar_prefetch=0,
            grid=(nsplits, bps),
            in_specs=in_specs,
            out_specs=pl.BlockSpec((1, 1, LANES), lambda c, i: (c, 0, 0)),
            scratch_shapes=[pltpu.VMEM((acc_rows, LANES), jnp.float32)],
        ),
        compiler_params=pltpu.CompilerParams(
            dimension_semantics=("parallel", "arbitrary"),
            vmem_limit_bytes=32 * 1024 * 1024,
        ),
    )(*inputs)

    # Tiny final reduce of the per-split lane-dense partial sums + lane tail.
    total = jnp.sum(partials) + tail_sum
    if scalar_weight is not None:
        total = total * scalar_weight
    return total


def _reference(ious, gious=None, weight=None, *, loc_loss_type="iou"):
    if loc_loss_type == "iou":
        losses = -jnp.log(ious)
    elif loc_loss_type == "linear_iou":
        losses = 1.0 - ious
    elif loc_loss_type == "giou":
        losses = 1.0 - gious
    else:
        raise NotImplementedError
    if weight is not None:
        return jnp.sum(losses * jnp.asarray(weight, jnp.float32))
    return jnp.sum(losses)


if __name__ == "__main__":
    key = jax.random.PRNGKey(0)
    k1, k2, k3 = jax.random.split(key, 3)

    ok = True
    # Shapes exercise: empty-input guard, tiny (<8 rows) + lane-tail path,
    # aligned single-block path (module-like (2,4,16,16)), and the multi-block
    # ragged-final-block path.
    shapes = [(0,), (1000,), (2, 4, 16, 16), (50000,)]
    for shape in shapes:
        ious = jax.random.uniform(k1, shape, jnp.float32, minval=0.05, maxval=0.99)
        gious = jax.random.uniform(k2, shape, jnp.float32, minval=-0.5, maxval=0.99)
        weight = jax.random.uniform(k3, shape, jnp.float32, minval=0.0, maxval=2.0)

        for mode in ("iou", "linear_iou", "giou"):
            for w in (weight, 0.5, None):
                got = iou_loss(ious, gious=gious, weight=w, loc_loss_type=mode)
                got = jax.block_until_ready(got)
                want = _reference(ious, gious=gious, weight=w, loc_loss_type=mode)
                if not jnp.allclose(got, want, rtol=1e-4, atol=1e-3):
                    ok = False
                    wtag = ("array" if isinstance(w, jnp.ndarray) else w)
                    print(f"mismatch shape={shape} mode={mode} weight={wtag}: "
                          f"{got} vs {want}")

    if ok:
        print("KERNEL_OK")
</pallas_src>

<mosaic_0001>
module attributes {stable_mosaic.version = 11 : i64} {
  func.func @_iou_loss_kernel(%arg0: i32, %arg1: i32, %arg2: memref<7x128xf32, #tpu.memory_space<vmem>>, %arg3: memref<7x128xf32, #tpu.memory_space<vmem>>, %arg4: memref<1x1x128xf32, #tpu.memory_space<vmem>>, %arg5: memref<7x128xf32, #tpu.memory_space<vmem>>) attributes {dimension_semantics = [#tpu.dimension_semantics<parallel>, #tpu.dimension_semantics<arbitrary>], iteration_bounds = array<i64: 1, 1>, scalar_prefetch = 0 : i64, scratch_operands = 1 : i64, tpu.core_type = #tpu.core_type<tc>, window_params = [{transform_indices = @transform_0, window_bounds = array<i64: 7, 128>}, {transform_indices = @transform_1, window_bounds = array<i64: 7, 128>}, {transform_indices = @transform_2, window_bounds = array<i64: 1, 1, 128>}]} {
    %c0_i32 = arith.constant 0 : i32
    %0 = arith.cmpi eq, %arg1, %c0_i32 : i32
    %1 = arith.extui %0 : i1 to i32
    %c0_i32_0 = arith.constant 0 : i32
    %2 = arith.cmpi ne, %1, %c0_i32_0 : i32
    scf.if %2 {
      %cst_11 = arith.constant 0.000000e+00 : f32
      %22 = vector.broadcast %cst_11 : f32 to vector<7x128xf32>
      %c0_12 = arith.constant 0 : index
      %c0_13 = arith.constant 0 : index
      %23 = vector.load %arg5[%c0_12, %c0_13] : memref<7x128xf32, #tpu.memory_space<vmem>>, vector<7x128xf32>
      tpu.vector_store %arg5[%c0_12, %c0_13], %22 {strides = array<i32>} : memref<7x128xf32, #tpu.memory_space<vmem>>, vector<7x128xf32>,
    } else {
    }
    %c0 = arith.constant 0 : index
    %c0_1 = arith.constant 0 : index
    %3 = vector.load %arg2[%c0, %c0_1] : memref<7x128xf32, #tpu.memory_space<vmem>>, vector<7x128xf32>
    %4 = math.log %3 : vector<7x128xf32>
    %cst = arith.constant 0.000000e+00 : f32
    %5 = vector.broadcast %cst : f32 to vector<7x128xf32>
    %6 = arith.subf %5, %4 : vector<7x128xf32>
    %c0_2 = arith.constant 0 : index
    %c0_3 = arith.constant 0 : index
    %7 = vector.load %arg3[%c0_2, %c0_3] : memref<7x128xf32, #tpu.memory_space<vmem>>, vector<7x128xf32>
    %8 = arith.mulf %6, %7 : vector<7x128xf32>
    %c1_i32 = arith.constant 1 : i32
    %9 = arith.muli %arg0, %c1_i32 : i32
    %10 = arith.addi %9, %arg1 : i32
    %c896_i32 = arith.constant 896 : i32
    %11 = arith.muli %10, %c896_i32 : i32
    %c896_i32_4 = arith.constant 896 : i32
    %12 = arith.subi %c896_i32_4, %11 : i32
    %c896_i32_5 = arith.constant 896 : i32
    %13 = arith.cmpi sge, %12, %c896_i32_5 : i32
    %14 = arith.extui %13 : i1 to i32
    %c0_i32_6 = arith.constant 0 : i32
    %15 = arith.cmpi ne, %14, %c0_i32_6 : i32
    scf.if %15 {
      %c0_11 = arith.constant 0 : index
      %c0_12 = arith.constant 0 : index
      %22 = vector.load %arg5[%c0_11, %c0_12] : memref<7x128xf32, #tpu.memory_space<vmem>>, vector<7x128xf32>
      %23 = arith.addf %22, %8 : vector<7x128xf32>
      %c0_13 = arith.constant 0 : index
      %c0_14 = arith.constant 0 : index
      %24 = vector.load %arg5[%c0_13, %c0_14] : memref<7x128xf32, #tpu.memory_space<vmem>>, vector<7x128xf32>
      tpu.vector_store %arg5[%c0_13, %c0_14], %23 {strides = array<i32>} : memref<7x128xf32, #tpu.memory_space<vmem>>, vector<7x128xf32>,
    } else {
    }
    %c896_i32_7 = arith.constant 896 : i32
    %16 = arith.cmpi slt, %12, %c896_i32_7 : i32
    %17 = arith.extui %16 : i1 to i32
    %c0_i32_8 = arith.constant 0 : i32
    %18 = arith.cmpi ne, %17, %c0_i32_8 : i32
    scf.if %18 {
      %22 = tpu.iota {dimensions = array<i32: 0>} : vector<7x128xi32>
      %23 = tpu.iota {dimensions = array<i32: 1>} : vector<7x128xi32>
      %c128_i32 = arith.constant 128 : i32
      %24 = vector.broadcast %c128_i32 : i32 to vector<7x128xi32>
      %25 = arith.muli %22, %24 : vector<7x128xi32>
      %26 = arith.addi %25, %23 : vector<7x128xi32>
      %27 = vector.broadcast %12 : i32 to vector<7x128xi32>
      %28 = arith.cmpi slt, %26, %27 : vector<7x128xi32>
      %cst_11 = arith.constant 0.000000e+00 : f32
      %29 = vector.broadcast %cst_11 : f32 to vector<7x128xf32>
      %30 = arith.select %28, %8, %29 : vector<7x128xi1>, vector<7x128xf32>
      %c0_12 = arith.constant 0 : index
      %c0_13 = arith.constant 0 : index
      %31 = vector.load %arg5[%c0_12, %c0_13] : memref<7x128xf32, #tpu.memory_space<vmem>>, vector<7x128xf32>
      %32 = arith.addf %31, %30 : vector<7x128xf32>
      %c0_14 = arith.constant 0 : index
      %c0_15 = arith.constant 0 : index
      %33 = vector.load %arg5[%c0_14, %c0_15] : memref<7x128xf32, #tpu.memory_space<vmem>>, vector<7x128xf32>
      tpu.vector_store %arg5[%c0_14, %c0_15], %32 {strides = array<i32>} : memref<7x128xf32, #tpu.memory_space<vmem>>, vector<7x128xf32>,
    } else {
    }
    %c0_i32_9 = arith.constant 0 : i32
    %19 = arith.cmpi eq, %arg1, %c0_i32_9 : i32
    %20 = arith.extui %19 : i1 to i32
    %c0_i32_10 = arith.constant 0 : i32
    %21 = arith.cmpi ne, %20, %c0_i32_10 : i32
    scf.if %21 {
      %c0_11 = arith.constant 0 : index
      %c0_12 = arith.constant 0 : index
      %22 = vector.load %arg5[%c0_11, %c0_12] : memref<7x128xf32, #tpu.memory_space<vmem>>, vector<7x128xf32>
      %cst_13 = arith.constant dense<0.000000e+00> : vector<128xf32>
      %23 = vector.multi_reduction <add>, %22, %cst_13 [0] : vector<7x128xf32> to vector<128xf32>
      %24 = vector.shape_cast %23 : vector<128xf32> to vector<1x128xf32>
      %c0_14 = arith.constant 0 : index
      %c0_15 = arith.constant 0 : index
      %c0_16 = arith.constant 0 : index
      %25 = vector.load %arg4[%c0_14, %c0_15, %c0_16] : memref<1x1x128xf32, #tpu.memory_space<vmem>>, vector<1x1x128xf32>
      %26 = vector.shape_cast %25 : vector<1x1x128xf32> to vector<1x128xf32>
      %27 = vector.shape_cast %24 : vector<1x128xf32> to vector<1x1x128xf32>
      tpu.vector_store %arg4[%c0_14, %c0_15, %c0_16], %27 {strides = array<i32>} : memref<1x1x128xf32, #tpu.memory_space<vmem>>, vector<1x1x128xf32>,
    } else {
    }
    return
  }
  func.func @transform_0(%arg0: i32, %arg1: i32) -> (i32, i32) {
    %c1_i32 = arith.constant 1 : i32
    %0 = arith.muli %arg0, %c1_i32 : i32
    %1 = arith.addi %0, %arg1 : i32
    %c0_i32 = arith.constant 0 : i32
    %2 = arith.minsi %1, %c0_i32 : i32
    %c0_i32_0 = arith.constant 0 : i32
    %c0_i32_1 = arith.constant 0 : i32
    return %2, %c0_i32_0 : i32, i32
  }
  func.func @transform_1(%arg0: i32, %arg1: i32) -> (i32, i32) {
    %c1_i32 = arith.constant 1 : i32
    %0 = arith.muli %arg0, %c1_i32 : i32
    %1 = arith.addi %0, %arg1 : i32
    %c0_i32 = arith.constant 0 : i32
    %2 = arith.minsi %1, %c0_i32 : i32
    %c0_i32_0 = arith.constant 0 : i32
    %c0_i32_1 = arith.constant 0 : i32
    return %2, %c0_i32_0 : i32, i32
  }
  func.func @transform_2(%arg0: i32, %arg1: i32) -> (i32, i32, i32) {
    %c0_i32 = arith.constant 0 : i32
    %c0_i32_0 = arith.constant 0 : i32
    %c0_i32_1 = arith.constant 0 : i32
    return %arg0, %c0_i32, %c0_i32_0 : i32, i32, i32
  }
}

</mosaic_0001>

<bundles_post_ra>
// kernel: tpu_custom_call.1
= control target key start
LH: loop header
LB: loop body
LE: loop exit
PB: predicated region body
PF: predicated region fallthrough
CT: control target
= control target key end

     0   :  { %7 = vsyncpa [#allocation4], 0  ;;  %s222_s0 = inlined_call_operand.hbm [shape: f32[7,128], index: 0, kind: input, shape index: {}]   ;;  %s223_s1 = inlined_call_operand.hbm [shape: f32[7,128], index: 1, kind: input, shape index: {}]   ;;  %s224_s2 = inlined_call_operand.hbm [shape: f32[1,1,128], index: 2, kind: output, shape index: {}]  }
   0x1   :  { %8 = vsyncpa [#allocation7], 0 }
   0x2   :  { %9 = vsyncpa [#allocation5], 0  ;;  %s194_s9 = smov [#allocation3]   ;;  %s195_s11 = smov [#allocation6]  }
   0x3   :  { %s21_s10 = sshll.u32 %s194_s9, 4  ;;  %s36_s12 = sshll.u32 %s195_s11, 4  ;;  %s22_s10 = int_to_ptr.vmem [resolvable:$true] %s21_s10  ;;  %s37_s12 = int_to_ptr.vmem [resolvable:$true] %s36_s12 }
   0x4   :  { %s136_s13 = scalar_lea.vmem %s22_s10, 128  ;;  %p141_p1 = scmp.lt.s32.totalorder %s22_s10, %s22_s10 }
   0x5   :  { %p137_p0 = scmp.ne.s32.totalorder %s22_s10, %s136_s13  ;;  %p142_p2 = scmp.lt.s32.totalorder %s136_s13, %s136_s13 }
   0x7   :  { %p143_p3 = por %p142_p2, %p141_p1 }
   0x9   :  { %p144_p4 = pnand %p143_p3, %p137_p0 }
   0xb   :  { %147 = shalt.err (!%p144_p4)
}
   0xc   :  { %24 = dma.hbm_to_vmem [thread:$0]  %s222_s0, 128, %s22_s10, [#allocation4]  }
   0xd   :  { %s156_s16 = scalar_lea.vmem %s37_s12, 128  ;;  %p161_p6 = scmp.lt.s32.totalorder %s37_s12, %s37_s12 }
   0xe   :  { %p157_p5 = scmp.ne.s32.totalorder %s37_s12, %s156_s16  ;;  %p162_p7 = scmp.lt.s32.totalorder %s156_s16, %s156_s16 }
  0x10   :  { %p163_p8 = por %p162_p7, %p161_p6 }
  0x12   :  { %p164_p9 = pnand %p163_p8, %p157_p5 }
  0x14   :  { %167 = shalt.err (!%p164_p9)
}
  0x15   :  { %39 = dma.hbm_to_vmem [thread:$0]  %s223_s1, 128, %s37_s12, [#allocation7]  }
  0x16   :  { %188 = dma.done.wait [#allocation4], 128  }
  0x17   :  { %189 = vsyncadd [#allocation4], 4294967168 }
  0x18   :  { %190 = dma.done.wait [#allocation7], 128  }
  0x19   :  { %191 = vsyncadd [#allocation7], 4294967168  ;;  %v196_v0 = vmov 0.0   ;;  %v57_v1 = vld [vmem:[#allocation3] sm:$0x7f]  ;;  %vm93_vm0 = vcmask 1046528  }
  0x1a   :  { %56 = vst [vmem:[#allocation2] sm:$0x7f] %v196_v0  ;;  %126 = vlog2.f32 %v57_v1  ;;  %v61_v4 = vld [vmem:[#allocation6] sm:$0x7f]  ;;  %s197_s0 = smov [#allocation8]  }
  0x1b   :  { %s108_s1 = sshll.u32 %s197_s0, 4  ;;  %s109_s1 = int_to_ptr.vmem [resolvable:$true] %s108_s1 }
  0x1c   :  { %s168_s19 = scalar_lea.vmem %s109_s1, 16  ;;  %s172_s20 = scalar_lea.vmem %s109_s1, 32 }
  0x1d   :  { %p169_p10 = scmp.ne.s32.totalorder %s109_s1, %s168_s19  ;;  %p173_p11 = scmp.lt.s32.totalorder %s109_s1, %s109_s1 }
  0x1e   :  { %p174_p12 = scmp.lt.s32.totalorder %s172_s20, %s168_s19 }
  0x20   :  { %p175_p13 = por %p174_p12, %p173_p11 }
  0x21   :  { %v70_v6 = vld [vmem:[#allocation2] sm:$0x7f] }
  0x22   :  { %p176_p0 = pnand %p175_p13, %p169_p10 }
  0x27   :  { %v127_v2 = vpop.eup %126 }
  0x28   :  { %v59_v3 = vmul.f32 0.6931472, %v127_v2 }
  0x2a   :  { %v60_v5 = vsub.f32 0.0, %v59_v3 }
  0x2c   :  { %v62_v7 = vmul.f32 %v61_v4, %v60_v5 }
  0x2e   :  { %v71_v8 = vadd.f32 %v70_v6, %v62_v7 }
  0x30   :  { %72 = vst [vmem:[#allocation2] sm:$0x7f] %v71_v8 }
  0x37   :  { %v92_v9 = vld [vmem:[#allocation2] sm:$0x7f] }
  0x38   :  { %v94_v10 = vsel %vm93_vm0, %v92_v9, 0.0 }
  0x39   :  { %v95_v11 = vrot.slane %v94_v10, 4 }
  0x3b   :  { %v96_v12 = vadd.f32 %v95_v11, %v94_v10 }
  0x3d   :  { %v97_v13 = vrot.slane %v96_v12, 2 }
  0x3f   :  { %v98_v14 = vadd.f32 %v97_v13, %v96_v12 }
  0x41   :  { %v99_v15 = vrot.slane %v98_v14, 1 }
  0x43   :  { %v100_v16 = vadd.f32 %v99_v15, %v98_v14 }
  0x45   :  { %101 = vst [vmem:[#allocation8] sm:$0x1] %v100_v16 }
  0x46   :  { %179 = shalt.err (!%p176_p0)
}
  0x47   :  { %111 = dma.vmem_to_hbm [thread:$0]  %s109_s1, 16, %s224_s2, [#allocation5]  }
  0x48   :  { %192 = dma.done.wait [#allocation5], 16  }
  0x49   :  { %193 = vsyncadd [#allocation5], 4294967280 }
  0x4a   :  { %115 = vsyncpa [#allocation4], 1 }
  0x4b   :  { %116 = vsyncpa [#allocation7], 1 }
  0x4c   :  { %117 = vsyncpa [#allocation5], 1 }

</bundles_post_ra>
